<compile_context>
chip_gen: v5e
topology: v5e:2x2
jax: 0.10.0
libtpu: 0.0.40
codegen_flags: <defaults>
</compile_context>

<pallas_src>
import numpy as np

import jax
import jax.numpy as jnp
from jax.experimental import pallas as pl
from jax.experimental.pallas import tpu as pltpu


# ----------------------------- Pallas kernel --------------------------------

def _make_fused_kernel(is_global_flags, C):
    """Build a fused kernel for a fixed, static list of pyramid branches."""

    def kernel(x_ref, *refs):
        o_ref = refs[-1]           # (1, C + sum(M), HW)
        mats = refs[:-1]
        x = x_ref[0]               # (C, HW)   lane dim = HW (dense)
        HW = x.shape[1]

        # Identity passthrough into the first C output channels.
        o_ref[0, 0:C, :] = x

        idx = 0
        off = C
        for is_global in is_global_flags:
            if is_global:
                # Pool kernel covers the whole image: pool == mean, upsample == broadcast.
                w = mats[idx][...]          # (M, C)  conv1x1 with BN scale folded
                b = mats[idx + 1][...]      # (M, 1)  folded BN bias
                idx += 2
                pooled = jnp.mean(x, axis=1, keepdims=True)                       # (C, 1)
                z = jnp.dot(w, pooled, preferred_element_type=jnp.float32)        # (M, 1)
                act = jnp.maximum(z + b, 0.0)                                     # BN+ReLU
                out = jnp.broadcast_to(act, (w.shape[0], HW))                     # (M, HW)
            else:
                pt = mats[idx][...]         # (HW, pq)  avg-pool matrix, transposed
                ut = mats[idx + 1][...]     # (pq, HW)  bilinear-upsample matrix, transposed
                w = mats[idx + 2][...]      # (M, C)
                b = mats[idx + 3][...]      # (M, 1)
                idx += 4
                pooled = jnp.dot(x, pt, preferred_element_type=jnp.float32)       # (C, pq)
                z = jnp.dot(w, pooled, preferred_element_type=jnp.float32)        # (M, pq)
                act = jnp.maximum(z + b, 0.0)                                     # BN+ReLU
                out = jnp.dot(act, ut, preferred_element_type=jnp.float32)        # (M, HW)
            M = out.shape[0]
            o_ref[0, off:off + M, :] = out          # lane-dense store (last dim = HW)
            off += M

    return kernel


# ----------------------------- JAX wrapper -----------------------------------

def pyramid_forward(x_nchw, branch_params):
    """PyramidModule.forward.  x_nchw: (B, C, H, W) -> (B, C + sum(M), H, W)."""
    B, C, H, W = x_nchw.shape
    HW = H * W
    x_flat = x_nchw.reshape(B, C, HW)    # pure reshape of NCHW, no transpose

    inputs = []
    in_specs = [pl.BlockSpec((1, C, HW), lambda b: (b, 0, 0))]
    is_global_flags = []
    flops = 0
    bytes_accessed = x_flat.size * 4
    M_total = 0

    for bp in branch_params:
        M = bp['w'].shape[0]
        M_total += M
        is_global_flags.append(bp['is_global'])
        if bp['is_global']:
            mats = [bp['w'], bp['b']]
            flops += B * (2 * C * HW + 2 * M * C + M * HW)
        else:
            pq = bp['pt'].shape[1]
            mats = [bp['pt'], bp['ut'], bp['w'], bp['b']]
            flops += B * 2 * (C * HW * pq + M * C * pq + M * pq * HW)
        for m in mats:
            inputs.append(m)
            in_specs.append(pl.BlockSpec(m.shape, lambda b: (0, 0)))  # all mats are 2-D
            bytes_accessed += m.size * 4

    Ctot = C + M_total
    bytes_accessed += B * Ctot * HW * 4

    kernel = _make_fused_kernel(tuple(is_global_flags), C)

    out = pl.pallas_call(
        kernel,
        out_shape=jax.ShapeDtypeStruct((B, Ctot, HW), jnp.float32),
        grid_spec=pltpu.PrefetchScalarGridSpec(
            num_scalar_prefetch=0,
            grid=(B,),
            in_specs=in_specs,
            out_specs=pl.BlockSpec((1, Ctot, HW), lambda b: (b, 0, 0)),
        ),
        compiler_params=pltpu.CompilerParams(
            dimension_semantics=("parallel",)),
        cost_estimate=pl.CostEstimate(
            flops=int(flops), transcendentals=0,
            bytes_accessed=int(bytes_accessed)),
    )(x_flat, *inputs)

    return out.reshape(B, Ctot, H, W)


# ----------------------------- parameter construction ------------------------

def avgpool_matrix(in_size, k):
    """(out, in) matrix implementing 1-D AvgPool(kernel=k, stride=k)."""
    out = in_size // k
    m = np.zeros((out, in_size), np.float32)
    for o in range(out):
        m[o, o * k:(o + 1) * k] = 1.0 / float(k)
    return m


def bilinear_matrix(out_size, in_size):
    """(out, in) matrix implementing PyTorch bilinear upsample, align_corners=False."""
    scale = in_size / out_size
    m = np.zeros((out_size, in_size), np.float32)
    for o in range(out_size):
        src = max(scale * (o + 0.5) - 0.5, 0.0)
        i0 = min(int(np.floor(src)), in_size - 1)
        i1 = min(i0 + 1, in_size - 1)
        lam = src - float(i0)
        m[o, i0] += 1.0 - lam
        m[o, i1] += lam
    return m


def make_branch_params(key, in_planes, middle_planes, H, W, kh, kw, eps=1e-5):
    """Deterministic conv/BN params + pooling/upsample matrices for one scale."""
    k1, k2, k3, k4, k5 = jax.random.split(key, 5)
    conv_w = 0.1 * jax.random.normal(k1, (middle_planes, in_planes), jnp.float32)
    gamma = 0.5 + jax.random.uniform(k2, (middle_planes,), jnp.float32)
    beta = 0.1 * jax.random.normal(k3, (middle_planes,), jnp.float32)
    run_mean = 0.1 * jax.random.normal(k4, (middle_planes,), jnp.float32)
    run_var = 0.5 + jax.random.uniform(k5, (middle_planes,), jnp.float32)

    bn_scale = gamma / jnp.sqrt(run_var + eps)
    w_folded = conv_w * bn_scale[:, None]            # (M, C) BN scale folded into conv
    bias = (beta - run_mean * bn_scale)[:, None]     # (M, 1) folded BN bias

    p = H // kh
    q = W // kw
    pool = np.kron(avgpool_matrix(H, kh), avgpool_matrix(W, kw))     # (p*q, H*W)
    up = np.kron(bilinear_matrix(H, p), bilinear_matrix(W, q))       # (H*W, p*q)

    return dict(
        w=jnp.asarray(w_folded, jnp.float32),        # (M, C)
        b=jnp.asarray(bias, jnp.float32),            # (M, 1)
        pt=jnp.asarray(pool.T, jnp.float32),         # (HW, pq)
        ut=jnp.asarray(up.T, jnp.float32),           # (pq, HW)
        is_global=(kh == H and kw == W),
    )


# ----------------------------- pure-JAX reference ----------------------------

def pyramid_reference(x_nchw, branch_params):
    """Pure-JAX reference using the same matrix formulation (for validation)."""
    B, C, H, W = x_nchw.shape
    HW = H * W
    x = x_nchw.reshape(B, C, HW)
    outs = [x]
    for bp in branch_params:
        pooled = jnp.einsum('bch,hp->bcp', x, bp['pt'])                  # (B, C, pq)
        z = jnp.einsum('mc,bcp->bmp', bp['w'], pooled) + bp['b'][None]   # (B, M, pq)
        act = jnp.maximum(z, 0.0)
        y = jnp.einsum('bmp,ph->bmh', act, bp['ut'])                     # (B, M, HW)
        outs.append(y)
    return jnp.concatenate(outs, axis=1).reshape(B, -1, H, W)


# ----------------------------- main ------------------------------------------

if __name__ == "__main__":
    # options.height = options.width = 16  (ratio 1), scales=[16, 8, 4, 2],
    # in_planes=4, middle_planes=4, batch=2, spatial 16x16.
    B, C, H, W = 2, 4, 16, 16
    middle_planes = 4
    scales = [16, 8, 4, 2]
    ratio = 1.0  # options.height / options.width

    key = jax.random.PRNGKey(0)
    kx, *kbranches = jax.random.split(key, 1 + len(scales))
    x = jax.random.normal(kx, (B, C, H, W), jnp.float32)

    branch_params = []
    for kb, s in zip(kbranches, scales):
        kh = int(s * ratio)
        kw = s
        branch_params.append(make_branch_params(kb, C, middle_planes, H, W, kh, kw))

    out = jax.block_until_ready(pyramid_forward(x, branch_params))
    ref = jax.block_until_ready(pyramid_reference(x, branch_params))

    assert out.shape == (B, C + len(scales) * middle_planes, H, W), out.shape
    np.testing.assert_allclose(np.asarray(out), np.asarray(ref), rtol=1e-5, atol=1e-5)

    print("KERNEL_OK")
</pallas_src>

<mosaic_0001>
module attributes {stable_mosaic.version = 11 : i64} {
  func.func @kernel(%arg0: i32, %arg1: memref<1x4x256xf32, #tpu.memory_space<vmem>>, %arg2: memref<4x4xf32, #tpu.memory_space<vmem>>, %arg3: memref<4x1xf32, #tpu.memory_space<vmem>>, %arg4: memref<256x4xf32, #tpu.memory_space<vmem>>, %arg5: memref<4x256xf32, #tpu.memory_space<vmem>>, %arg6: memref<4x4xf32, #tpu.memory_space<vmem>>, %arg7: memref<4x1xf32, #tpu.memory_space<vmem>>, %arg8: memref<256x16xf32, #tpu.memory_space<vmem>>, %arg9: memref<16x256xf32, #tpu.memory_space<vmem>>, %arg10: memref<4x4xf32, #tpu.memory_space<vmem>>, %arg11: memref<4x1xf32, #tpu.memory_space<vmem>>, %arg12: memref<256x64xf32, #tpu.memory_space<vmem>>, %arg13: memref<64x256xf32, #tpu.memory_space<vmem>>, %arg14: memref<4x4xf32, #tpu.memory_space<vmem>>, %arg15: memref<4x1xf32, #tpu.memory_space<vmem>>, %arg16: memref<1x20x256xf32, #tpu.memory_space<vmem>>) attributes {dimension_semantics = [#tpu.dimension_semantics<parallel>], iteration_bounds = array<i64: 2>, scalar_prefetch = 0 : i64, scratch_operands = 0 : i64, tpu.core_type = #tpu.core_type<tc>, window_params = [{transform_indices = @transform_0, window_bounds = array<i64: 1, 4, 256>}, {pipeline_mode = #tpu.pipeline_mode<synchronous>, transform_indices = @transform_1, window_bounds = array<i64: 4, 4>}, {pipeline_mode = #tpu.pipeline_mode<synchronous>, transform_indices = @transform_2, window_bounds = array<i64: 4, 1>}, {pipeline_mode = #tpu.pipeline_mode<synchronous>, transform_indices = @transform_3, window_bounds = array<i64: 256, 4>}, {pipeline_mode = #tpu.pipeline_mode<synchronous>, transform_indices = @transform_4, window_bounds = array<i64: 4, 256>}, {pipeline_mode = #tpu.pipeline_mode<synchronous>, transform_indices = @transform_5, window_bounds = array<i64: 4, 4>}, {pipeline_mode = #tpu.pipeline_mode<synchronous>, transform_indices = @transform_6, window_bounds = array<i64: 4, 1>}, {pipeline_mode = #tpu.pipeline_mode<synchronous>, transform_indices = @transform_7, window_bounds = array<i64: 256, 16>}, {pipeline_mode = #tpu.pipeline_mode<synchronous>, transform_indices = @transform_8, window_bounds = array<i64: 16, 256>}, {pipeline_mode = #tpu.pipeline_mode<synchronous>, transform_indices = @transform_9, window_bounds = array<i64: 4, 4>}, {pipeline_mode = #tpu.pipeline_mode<synchronous>, transform_indices = @transform_10, window_bounds = array<i64: 4, 1>}, {pipeline_mode = #tpu.pipeline_mode<synchronous>, transform_indices = @transform_11, window_bounds = array<i64: 256, 64>}, {pipeline_mode = #tpu.pipeline_mode<synchronous>, transform_indices = @transform_12, window_bounds = array<i64: 64, 256>}, {pipeline_mode = #tpu.pipeline_mode<synchronous>, transform_indices = @transform_13, window_bounds = array<i64: 4, 4>}, {pipeline_mode = #tpu.pipeline_mode<synchronous>, transform_indices = @transform_14, window_bounds = array<i64: 4, 1>}, {transform_indices = @transform_15, window_bounds = array<i64: 1, 20, 256>}]} {
    %c0 = arith.constant 0 : index
    %c0_0 = arith.constant 0 : index
    %c0_1 = arith.constant 0 : index
    %0 = vector.load %arg1[%c0, %c0_0, %c0_1] : memref<1x4x256xf32, #tpu.memory_space<vmem>>, vector<1x4x256xf32>
    %1 = vector.shape_cast %0 : vector<1x4x256xf32> to vector<4x256xf32>
    %c0_2 = arith.constant 0 : index
    %c0_3 = arith.constant 0 : index
    %c0_4 = arith.constant 0 : index
    %2 = vector.load %arg16[%c0_2, %c0_3, %c0_4] : memref<1x20x256xf32, #tpu.memory_space<vmem>>, vector<1x4x256xf32>
    %3 = vector.shape_cast %2 : vector<1x4x256xf32> to vector<4x256xf32>
    %4 = vector.shape_cast %1 : vector<4x256xf32> to vector<1x4x256xf32>
    tpu.vector_store %arg16[%c0_2, %c0_3, %c0_4], %4 {strides = array<i32>} : memref<1x20x256xf32, #tpu.memory_space<vmem>>, vector<1x4x256xf32>,
    %c0_5 = arith.constant 0 : index
    %c0_6 = arith.constant 0 : index
    %5 = vector.load %arg2[%c0_5, %c0_6] : memref<4x4xf32, #tpu.memory_space<vmem>>, vector<4x4xf32>
    %c0_7 = arith.constant 0 : index
    %c0_8 = arith.constant 0 : index
    %6 = vector.load %arg3[%c0_7, %c0_8] : memref<4x1xf32, #tpu.memory_space<vmem>>, vector<4x1xf32>
    %cst = arith.constant dense<0.000000e+00> : vector<4xf32>
    %7 = vector.multi_reduction <add>, %1, %cst [1] : vector<4x256xf32> to vector<4xf32>
    %8 = vector.shape_cast %7 : vector<4xf32> to vector<4x1xf32>
    %cst_9 = arith.constant 2.560000e+02 : f32
    %9 = vector.broadcast %cst_9 : f32 to vector<4x1xf32>
    %10 = arith.divf %8, %9 : vector<4x1xf32>
    %cst_10 = arith.constant dense<0.000000e+00> : vector<4x1xf32>
    %11 = tpu.matmul %5, %10, %cst_10 {dimension_numbers = #tpu.dot_dimension_numbers<[1], [0], [0], [1], [0, 0, 1, 1], [], []>} : vector<4x4xf32>, vector<4x1xf32>, vector<4x1xf32> -> vector<4x1xf32>
    %12 = arith.addf %11, %6 : vector<4x1xf32>
    %cst_11 = arith.constant 0.000000e+00 : f32
    %13 = vector.broadcast %cst_11 : f32 to vector<4x1xf32>
    %14 = arith.maximumf %12, %13 : vector<4x1xf32>
    %15 = vector.shape_cast %14 : vector<4x1xf32> to vector<4x1xf32>
    %16 = vector.broadcast %15 : vector<4x1xf32> to vector<4x256xf32>
    %c0_12 = arith.constant 0 : index
    %c4 = arith.constant 4 : index
    %c0_13 = arith.constant 0 : index
    %17 = vector.load %arg16[%c0_12, %c4, %c0_13] : memref<1x20x256xf32, #tpu.memory_space<vmem>>, vector<1x4x256xf32>
    %18 = vector.shape_cast %17 : vector<1x4x256xf32> to vector<4x256xf32>
    %19 = vector.shape_cast %16 : vector<4x256xf32> to vector<1x4x256xf32>
    tpu.vector_store %arg16[%c0_12, %c4, %c0_13], %19 {strides = array<i32>} : memref<1x20x256xf32, #tpu.memory_space<vmem>>, vector<1x4x256xf32>,
    %c0_14 = arith.constant 0 : index
    %c0_15 = arith.constant 0 : index
    %20 = vector.load %arg4[%c0_14, %c0_15] : memref<256x4xf32, #tpu.memory_space<vmem>>, vector<256x4xf32>
    %c0_16 = arith.constant 0 : index
    %c0_17 = arith.constant 0 : index
    %21 = vector.load %arg5[%c0_16, %c0_17] : memref<4x256xf32, #tpu.memory_space<vmem>>, vector<4x256xf32>
    %c0_18 = arith.constant 0 : index
    %c0_19 = arith.constant 0 : index
    %22 = vector.load %arg6[%c0_18, %c0_19] : memref<4x4xf32, #tpu.memory_space<vmem>>, vector<4x4xf32>
    %c0_20 = arith.constant 0 : index
    %c0_21 = arith.constant 0 : index
    %23 = vector.load %arg7[%c0_20, %c0_21] : memref<4x1xf32, #tpu.memory_space<vmem>>, vector<4x1xf32>
    %cst_22 = arith.constant dense<0.000000e+00> : vector<4x4xf32>
    %24 = tpu.matmul %1, %20, %cst_22 {dimension_numbers = #tpu.dot_dimension_numbers<[1], [0], [0], [1], [0, 0, 1, 1], [], []>} : vector<4x256xf32>, vector<256x4xf32>, vector<4x4xf32> -> vector<4x4xf32>
    %cst_23 = arith.constant dense<0.000000e+00> : vector<4x4xf32>
    %25 = tpu.matmul %22, %24, %cst_23 {dimension_numbers = #tpu.dot_dimension_numbers<[1], [0], [0], [1], [0, 0, 1, 1], [], []>} : vector<4x4xf32>, vector<4x4xf32>, vector<4x4xf32> -> vector<4x4xf32>
    %26 = vector.broadcast %23 : vector<4x1xf32> to vector<4x4xf32>
    %27 = arith.addf %25, %26 : vector<4x4xf32>
    %cst_24 = arith.constant 0.000000e+00 : f32
    %28 = vector.broadcast %cst_24 : f32 to vector<4x4xf32>
    %29 = arith.maximumf %27, %28 : vector<4x4xf32>
    %cst_25 = arith.constant dense<0.000000e+00> : vector<4x256xf32>
    %30 = tpu.matmul %29, %21, %cst_25 {dimension_numbers = #tpu.dot_dimension_numbers<[1], [0], [0], [1], [0, 0, 1, 1], [], []>} : vector<4x4xf32>, vector<4x256xf32>, vector<4x256xf32> -> vector<4x256xf32>
    %c0_26 = arith.constant 0 : index
    %c8 = arith.constant 8 : index
    %c0_27 = arith.constant 0 : index
    %31 = vector.load %arg16[%c0_26, %c8, %c0_27] : memref<1x20x256xf32, #tpu.memory_space<vmem>>, vector<1x4x256xf32>
    %32 = vector.shape_cast %31 : vector<1x4x256xf32> to vector<4x256xf32>
    %33 = vector.shape_cast %30 : vector<4x256xf32> to vector<1x4x256xf32>
    tpu.vector_store %arg16[%c0_26, %c8, %c0_27], %33 {strides = array<i32>} : memref<1x20x256xf32, #tpu.memory_space<vmem>>, vector<1x4x256xf32>,
    %c0_28 = arith.constant 0 : index
    %c0_29 = arith.constant 0 : index
    %34 = vector.load %arg8[%c0_28, %c0_29] : memref<256x16xf32, #tpu.memory_space<vmem>>, vector<256x16xf32>
    %c0_30 = arith.constant 0 : index
    %c0_31 = arith.constant 0 : index
    %35 = vector.load %arg9[%c0_30, %c0_31] : memref<16x256xf32, #tpu.memory_space<vmem>>, vector<16x256xf32>
    %c0_32 = arith.constant 0 : index
    %c0_33 = arith.constant 0 : index
    %36 = vector.load %arg10[%c0_32, %c0_33] : memref<4x4xf32, #tpu.memory_space<vmem>>, vector<4x4xf32>
    %c0_34 = arith.constant 0 : index
    %c0_35 = arith.constant 0 : index
    %37 = vector.load %arg11[%c0_34, %c0_35] : memref<4x1xf32, #tpu.memory_space<vmem>>, vector<4x1xf32>
    %cst_36 = arith.constant dense<0.000000e+00> : vector<4x16xf32>
    %38 = tpu.matmul %1, %34, %cst_36 {dimension_numbers = #tpu.dot_dimension_numbers<[1], [0], [0], [1], [0, 0, 1, 1], [], []>} : vector<4x256xf32>, vector<256x16xf32>, vector<4x16xf32> -> vector<4x16xf32>
    %cst_37 = arith.constant dense<0.000000e+00> : vector<4x16xf32>
    %39 = tpu.matmul %36, %38, %cst_37 {dimension_numbers = #tpu.dot_dimension_numbers<[1], [0], [0], [1], [0, 0, 1, 1], [], []>} : vector<4x4xf32>, vector<4x16xf32>, vector<4x16xf32> -> vector<4x16xf32>
    %40 = vector.broadcast %37 : vector<4x1xf32> to vector<4x16xf32>
    %41 = arith.addf %39, %40 : vector<4x16xf32>
    %cst_38 = arith.constant 0.000000e+00 : f32
    %42 = vector.broadcast %cst_38 : f32 to vector<4x16xf32>
    %43 = arith.maximumf %41, %42 : vector<4x16xf32>
    %cst_39 = arith.constant dense<0.000000e+00> : vector<4x256xf32>
    %44 = tpu.matmul %43, %35, %cst_39 {dimension_numbers = #tpu.dot_dimension_numbers<[1], [0], [0], [1], [0, 0, 1, 1], [], []>} : vector<4x16xf32>, vector<16x256xf32>, vector<4x256xf32> -> vector<4x256xf32>
    %c0_40 = arith.constant 0 : index
    %c12 = arith.constant 12 : index
    %c0_41 = arith.constant 0 : index
    %45 = vector.load %arg16[%c0_40, %c12, %c0_41] : memref<1x20x256xf32, #tpu.memory_space<vmem>>, vector<1x4x256xf32>
    %46 = vector.shape_cast %45 : vector<1x4x256xf32> to vector<4x256xf32>
    %47 = vector.shape_cast %44 : vector<4x256xf32> to vector<1x4x256xf32>
    tpu.vector_store %arg16[%c0_40, %c12, %c0_41], %47 {strides = array<i32>} : memref<1x20x256xf32, #tpu.memory_space<vmem>>, vector<1x4x256xf32>,
    %c0_42 = arith.constant 0 : index
    %c0_43 = arith.constant 0 : index
    %48 = vector.load %arg12[%c0_42, %c0_43] : memref<256x64xf32, #tpu.memory_space<vmem>>, vector<256x64xf32>
    %c0_44 = arith.constant 0 : index
    %c0_45 = arith.constant 0 : index
    %49 = vector.load %arg13[%c0_44, %c0_45] : memref<64x256xf32, #tpu.memory_space<vmem>>, vector<64x256xf32>
    %c0_46 = arith.constant 0 : index
    %c0_47 = arith.constant 0 : index
    %50 = vector.load %arg14[%c0_46, %c0_47] : memref<4x4xf32, #tpu.memory_space<vmem>>, vector<4x4xf32>
    %c0_48 = arith.constant 0 : index
    %c0_49 = arith.constant 0 : index
    %51 = vector.load %arg15[%c0_48, %c0_49] : memref<4x1xf32, #tpu.memory_space<vmem>>, vector<4x1xf32>
    %cst_50 = arith.constant dense<0.000000e+00> : vector<4x64xf32>
    %52 = tpu.matmul %1, %48, %cst_50 {dimension_numbers = #tpu.dot_dimension_numbers<[1], [0], [0], [1], [0, 0, 1, 1], [], []>} : vector<4x256xf32>, vector<256x64xf32>, vector<4x64xf32> -> vector<4x64xf32>
    %cst_51 = arith.constant dense<0.000000e+00> : vector<4x64xf32>
    %53 = tpu.matmul %50, %52, %cst_51 {dimension_numbers = #tpu.dot_dimension_numbers<[1], [0], [0], [1], [0, 0, 1, 1], [], []>} : vector<4x4xf32>, vector<4x64xf32>, vector<4x64xf32> -> vector<4x64xf32>
    %54 = vector.broadcast %51 : vector<4x1xf32> to vector<4x64xf32>
    %55 = arith.addf %53, %54 : vector<4x64xf32>
    %cst_52 = arith.constant 0.000000e+00 : f32
    %56 = vector.broadcast %cst_52 : f32 to vector<4x64xf32>
    %57 = arith.maximumf %55, %56 : vector<4x64xf32>
    %cst_53 = arith.constant dense<0.000000e+00> : vector<4x256xf32>
    %58 = tpu.matmul %57, %49, %cst_53 {dimension_numbers = #tpu.dot_dimension_numbers<[1], [0], [0], [1], [0, 0, 1, 1], [], []>} : vector<4x64xf32>, vector<64x256xf32>, vector<4x256xf32> -> vector<4x256xf32>
    %c0_54 = arith.constant 0 : index
    %c16 = arith.constant 16 : index
    %c0_55 = arith.constant 0 : index
    %59 = vector.load %arg16[%c0_54, %c16, %c0_55] : memref<1x20x256xf32, #tpu.memory_space<vmem>>, vector<1x4x256xf32>
    %60 = vector.shape_cast %59 : vector<1x4x256xf32> to vector<4x256xf32>
    %61 = vector.shape_cast %58 : vector<4x256xf32> to vector<1x4x256xf32>
    tpu.vector_store %arg16[%c0_54, %c16, %c0_55], %61 {strides = array<i32>} : memref<1x20x256xf32, #tpu.memory_space<vmem>>, vector<1x4x256xf32>,
    return
  }
  func.func @transform_0(%arg0: i32) -> (i32, i32, i32) {
    %c0_i32 = arith.constant 0 : i32
    %c0_i32_0 = arith.constant 0 : i32
    %c0_i32_1 = arith.constant 0 : i32
    return %arg0, %c0_i32, %c0_i32_0 : i32, i32, i32
  }
  func.func @transform_1(%arg0: i32) -> (i32, i32) {
    %c0_i32 = arith.constant 0 : i32
    %c0_i32_0 = arith.constant 0 : i32
    %c0_i32_1 = arith.constant 0 : i32
    return %c0_i32, %c0_i32_0 : i32, i32
  }
  func.func @transform_2(%arg0: i32) -> (i32, i32) {
    %c0_i32 = arith.constant 0 : i32
    %c0_i32_0 = arith.constant 0 : i32
    %c0_i32_1 = arith.constant 0 : i32
    return %c0_i32, %c0_i32_0 : i32, i32
  }
  func.func @transform_3(%arg0: i32) -> (i32, i32) {
    %c0_i32 = arith.constant 0 : i32
    %c0_i32_0 = arith.constant 0 : i32
    %c0_i32_1 = arith.constant 0 : i32
    return %c0_i32, %c0_i32_0 : i32, i32
  }
  func.func @transform_4(%arg0: i32) -> (i32, i32) {
    %c0_i32 = arith.constant 0 : i32
    %c0_i32_0 = arith.constant 0 : i32
    %c0_i32_1 = arith.constant 0 : i32
    return %c0_i32, %c0_i32_0 : i32, i32
  }
  func.func @transform_5(%arg0: i32) -> (i32, i32) {
    %c0_i32 = arith.constant 0 : i32
    %c0_i32_0 = arith.constant 0 : i32
    %c0_i32_1 = arith.constant 0 : i32
    return %c0_i32, %c0_i32_0 : i32, i32
  }
  func.func @transform_6(%arg0: i32) -> (i32, i32) {
    %c0_i32 = arith.constant 0 : i32
    %c0_i32_0 = arith.constant 0 : i32
    %c0_i32_1 = arith.constant 0 : i32
    return %c0_i32, %c0_i32_0 : i32, i32
  }
  func.func @transform_7(%arg0: i32) -> (i32, i32) {
    %c0_i32 = arith.constant 0 : i32
    %c0_i32_0 = arith.constant 0 : i32
    %c0_i32_1 = arith.constant 0 : i32
    return %c0_i32, %c0_i32_0 : i32, i32
  }
  func.func @transform_8(%arg0: i32) -> (i32, i32) {
    %c0_i32 = arith.constant 0 : i32
    %c0_i32_0 = arith.constant 0 : i32
    %c0_i32_1 = arith.constant 0 : i32
    return %c0_i32, %c0_i32_0 : i32, i32
  }
  func.func @transform_9(%arg0: i32) -> (i32, i32) {
    %c0_i32 = arith.constant 0 : i32
    %c0_i32_0 = arith.constant 0 : i32
    %c0_i32_1 = arith.constant 0 : i32
    return %c0_i32, %c0_i32_0 : i32, i32
  }
  func.func @transform_10(%arg0: i32) -> (i32, i32) {
    %c0_i32 = arith.constant 0 : i32
    %c0_i32_0 = arith.constant 0 : i32
    %c0_i32_1 = arith.constant 0 : i32
    return %c0_i32, %c0_i32_0 : i32, i32
  }
  func.func @transform_11(%arg0: i32) -> (i32, i32) {
    %c0_i32 = arith.constant 0 : i32
    %c0_i32_0 = arith.constant 0 : i32
    %c0_i32_1 = arith.constant 0 : i32
    return %c0_i32, %c0_i32_0 : i32, i32
  }
  func.func @transform_12(%arg0: i32) -> (i32, i32) {
    %c0_i32 = arith.constant 0 : i32
    %c0_i32_0 = arith.constant 0 : i32
    %c0_i32_1 = arith.constant 0 : i32
    return %c0_i32, %c0_i32_0 : i32, i32
  }
  func.func @transform_13(%arg0: i32) -> (i32, i32) {
    %c0_i32 = arith.constant 0 : i32
    %c0_i32_0 = arith.constant 0 : i32
    %c0_i32_1 = arith.constant 0 : i32
    return %c0_i32, %c0_i32_0 : i32, i32
  }
  func.func @transform_14(%arg0: i32) -> (i32, i32) {
    %c0_i32 = arith.constant 0 : i32
    %c0_i32_0 = arith.constant 0 : i32
    %c0_i32_1 = arith.constant 0 : i32
    return %c0_i32, %c0_i32_0 : i32, i32
  }
  func.func @transform_15(%arg0: i32) -> (i32, i32, i32) {
    %c0_i32 = arith.constant 0 : i32
    %c0_i32_0 = arith.constant 0 : i32
    %c0_i32_1 = arith.constant 0 : i32
    return %arg0, %c0_i32, %c0_i32_0 : i32, i32, i32
  }
}

</mosaic_0001>

<bundles_post_ra>
// kernel: tpu_custom_call.1
= control target key start
LH: loop header
LB: loop body
LE: loop exit
PB: predicated region body
PF: predicated region fallthrough
CT: control target
= control target key end

     0   :  { %s1254_s18 = smov 0   ;;  %s1689_s0 = inlined_call_operand.vmem [shape: f32[2,4,256], index: 0, kind: input, shape index: {}]   ;;  %s1690_s1 = inlined_call_operand.vmem [shape: f32[4,4], index: 1, kind: input, shape index: {}]   ;;  %s1691_s2 = inlined_call_operand.vmem [shape: f32[4,1], index: 2, kind: input, shape index: {}]   ;;  %s1692_s3 = inlined_call_operand.vmem [shape: f32[256,4], index: 3, kind: input, shape index: {}]   ;;  %s1693_s4 = inlined_call_operand.vmem [shape: f32[4,256], index: 4, kind: input, shape index: {}]   ;;  %s1694_s5 = inlined_call_operand.vmem [shape: f32[4,4], index: 5, kind: input, shape index: {}]   ;;  %s1695_s6 = inlined_call_operand.vmem [shape: f32[4,1], index: 6, kind: input, shape index: {}]   ;;  %s1696_s7 = inlined_call_operand.vmem [shape: f32[256,16], index: 7, kind: input, shape index: {}]   ;;  %s1697_s8 = inlined_call_operand.vmem [shape: f32[16,256], index: 8, kind: input, shape index: {}]   ;;  %s1698_s9 = inlined_call_operand.vmem [shape: f32[4,4], index: 9, kind: input, shape index: {}]   ;;  %s1699_s10 = inlined_call_operand.vmem [shape: f32[4,1], index: 10, kind: input, shape index: {}]   ;;  %s1700_s11 = inlined_call_operand.vmem [shape: f32[256,64], index: 11, kind: input, shape index: {}]   ;;  %s1701_s12 = inlined_call_operand.vmem [shape: f32[64,256], index: 12, kind: input, shape index: {}]   ;;  %s1702_s13 = inlined_call_operand.vmem [shape: f32[4,4], index: 13, kind: input, shape index: {}]   ;;  %s1703_s14 = inlined_call_operand.vmem [shape: f32[4,1], index: 14, kind: input, shape index: {}]   ;;  %s1704_s15 = inlined_call_operand.vmem [shape: f32[2,20,256], index: 15, kind: output, shape index: {}]  }
   0x1 LB: > { %s1121_s19 = sadd.s32 4294967295, %s1170_s18   ;;  %p1125_p0 = scmp.ge.s32.totalorder %s1170_s18, 1  ;;  %s1170_s18 = sphi %s1254_s18, %s25_s18  }
   0x2   : > { %p437_p1 = scmp.lt.s32.totalorder %s1170_s18, 3 }
   0x4   : > { %p438_p2 = pnand %p1125_p0, %p437_p1 }
   0x5   : > { %p485_p3 = scmp.lt.s32.totalorder (!%p438_p2), %s1121_s19, 1 }
   0x6   : > { %441 = sbr.rel (%p438_p2) target bundleno = 1135 (0x46f), region = 80 }
   0xb   : > { %v592_v0 = vld [vmem:[%s1692_s3 + $0xf8] sm:$0xff]  ;;  %v591_v1 = vld [vmem:[%s1692_s3 + $0xf0] sm:$0xff]  ;;  %s1706_s19 = smov (!%p485_p3, %s1121_s19), 1  ;;  %vm511_vm0 = vcmask 1043456   ;;  %v590_v10 = vld [vmem:[%s1692_s3 + $0xe8] sm:$0xff]  ;;  %v1172_v12 = vmov 256.0  }
   0xc   : > { %621 = vmatpush.msra.mxu2 %v592_v0  ;;  %s1147_s24 = sshll.u32 %s1706_s19, 3  ;;  %v589_v11 = vld [vmem:[%s1692_s3 + $0xe0] sm:$0xff]  ;;  %1162 = vrcp.f32 %v1172_v12  ;;  %v588_v13 = vld [vmem:[%s1692_s3 + $0xd8] sm:$0xff]  ;;  %v587_v14 = vld [vmem:[%s1692_s3 + $0xd0] sm:$0xff]  ;;  %vm525_vm2 = vcmask 31744   ;;  %v1173_v53 = vmov 0  }
   0xd   : > { %s489_s27 = scalar_lea.vmem %s1689_s0, %s1147_s24  ;;  %v586_v15 = vld [vmem:[%s1692_s3 + $0xc8] sm:$0xff]  ;;  %v585_v17 = vld [vmem:[%s1692_s3 + $0xc0] sm:$0xff]  ;;  %v584_v18 = vld [vmem:[%s1692_s3 + $0xb8] sm:$0xff]  ;;  %1161 = vset.pattern.permute.xlu2 %v1173_v53  ;;  %1159 = vset.pattern.permute.xlu0 %v1173_v53  ;;  %vm841_vm3 = vcmask 130048   ;;  %vm1020_vm4 = vcmask 523264  }
   0xe   : > { %622 = vmatpush.msra.mxu2 %v591_v1  ;;  %v1274_v2 = vld [vmem:[%s489_s27] sm:$0xff]  ;;  %v583_v20 = vld [vmem:[%s1692_s3 + $0xb0] sm:$0xff]  ;;  %v582_v21 = vld [vmem:[%s1692_s3 + $0xa8] sm:$0xff]  ;;  %s1148_s27 = smul.u32 48, %s1706_s19  ;;  %1160 = vset.pattern.permute.xlu1 %v1173_v53 }
   0xf   : > { %497 = vst [vmem:[#allocation1] ss:$2 sm:$0xff] %v1274_v2  ;;  %v581_v23 = vld [vmem:[%s1692_s3 + $0xa0] sm:$0xff]  ;;  %v580_v24 = vld [vmem:[%s1692_s3 + $0x98] sm:$0xff]  ;;  %v579_v26 = vld [vmem:[%s1692_s3 + $0x90] sm:$0xff] }
  0x10   : > { %623 = vmatpush.msra.mxu2 %v590_v10  ;;  %v578_v27 = vld [vmem:[%s1692_s3 + $0x88] sm:$0xff]  ;;  %v577_v29 = vld [vmem:[%s1692_s3 + $0x80] sm:$0xff]  ;;  %v576_v34 = vld [vmem:[%s1692_s3 + $0x78] sm:$0xff]  ;;  %s1387_s30 = scalar_lea.vmem %s1704_s15, %s1148_s27 }
  0x11   : > { %v504_v35 = vld [vmem:[%s1690_s1] sm:$0xf]  ;;  %v575_v38 = vld [vmem:[%s1692_s3 + $0x70] sm:$0xff]  ;;  %v574_v39 = vld [vmem:[%s1692_s3 + $0x68] sm:$0xff] }
  0x12   : > { %624 = vmatpush.msra.mxu2 %v589_v11  ;;  %v1163_v16 = vpop.eup %1162  ;;  %v593_v36 = vld [vmem:[%s1693_s4] sm:$0xff]  ;;  %v572_v41 = vld [vmem:[%s1692_s3 + $0x58] sm:$0xff]  ;;  %v571_v42 = vld [vmem:[%s1692_s3 + $0x50] sm:$0xff] }
  0x13   : > { %v518_v19 = vmul.f32 256.0, %v1163_v16  ;;  %vm522_vm1 = vweird.f32 %v1163_v16  ;;  %v573_v40 = vld [vmem:[%s1692_s3 + $0x60] sm:$0xff]  ;;  %v570_v43 = vld [vmem:[%s1692_s3 + $0x48] sm:$0xff]  ;;  %v568_v45 = vld [vmem:[%s1692_s3 + $0x38] sm:$0xff] }
  0x14   : > { %625 = vmatpush.msra.mxu2 %v588_v13  ;;  %v569_v44 = vld [vmem:[%s1692_s3 + $0x40] sm:$0xff]  ;;  %v567_v46 = vld [vmem:[%s1692_s3 + $0x30] sm:$0xff]  ;;  %v566_v47 = vld [vmem:[%s1692_s3 + $0x28] sm:$0xff] }
  0x15   : > { %v519_v22 = vsub.f32 1.0, %v518_v19  ;;  %v565_v48 = vld [vmem:[%s1692_s3 + $0x20] sm:$0xff]  ;;  %v564_v49 = vld [vmem:[%s1692_s3 + $0x18] sm:$0xff]  ;;  %v563_v50 = vld [vmem:[%s1692_s3 + $0x10] sm:$0xff] }
  0x16   : > { %v1277_v3 = vld.sshfl [vmem:[#allocation1] sm:$0xff pattern:$0x75316420]  ;;  %v1279_v4 = vld.sshfl [vmem:[#allocation1 + $0x8] sm:$0xff pattern:$0x75316420]  ;;  %626 = vmatpush.msra.mxu2 %v587_v14 }
  0x17   : > { %506 = vst [vmem:[#allocation1] ss:$2 sm:$0xff] %v1274_v2  ;;  %v520_v25 = vmul.f32 %v1163_v16, %v519_v22  ;;  %v562_v51 = vld [vmem:[%s1692_s3 + $0x8] sm:$0xff]  ;;  %v561_v52 = vld [vmem:[%s1692_s3] sm:$0xff]  ;;  %v757_v0 = vld [vmem:[%s1696_s7 + $0xf8] sm:$0xff] }
  0x18   : > { %627 = vmatpush.msra.mxu2 %v586_v15  ;;  %503 = vst [vmem:[%s1387_s30 + $0x8] sm:$0xf] %v1279_v4  ;;  %v505_v54 = vld [vmem:[%s1691_s2] sm:$0xf]  ;;  %v756_v1 = vld [vmem:[%s1696_s7 + $0xf0] sm:$0xff]  ;;  %v741_v4 = vld [vmem:[%s1696_s7 + $0x78] sm:$0xff] }
  0x19   : > { %v521_v28 = vadd.f32 %v1163_v16, %v520_v25  ;;  %502 = vst [vmem:[%s1387_s30] sm:$0xf] %v1277_v3  ;;  %v595_v57 = vld [vmem:[%s1695_s6] sm:$0xf]  ;;  %v753_v10 = vld [vmem:[%s1696_s7 + $0xd8] sm:$0xff]  ;;  %v752_v12 = vld [vmem:[%s1696_s7 + $0xd0] sm:$0xff] }
  0x1a   : > { %628 = vmatpush.msra.mxu2 %v585_v17  ;;  %v594_v62 = vld [vmem:[%s1694_s5] sm:$0xf]  ;;  %v737_v11 = vld [vmem:[%s1696_s7 + $0x58] sm:$0xff]  ;;  %v736_v13 = vld [vmem:[%s1696_s7 + $0x50] sm:$0xff] }
  0x1b   : > { %v523_v31 = vsel %vm522_vm1, %v1163_v16, %v521_v28  ;;  %v751_v14 = vld [vmem:[%s1696_s7 + $0xc8] sm:$0xff]  ;;  %v750_v15 = vld [vmem:[%s1696_s7 + $0xc0] sm:$0xff]  ;;  %v749_v16 = vld [vmem:[%s1696_s7 + $0xb8] sm:$0xff] }
  0x1c   : > { %629 = vmatpush.msra.mxu2 %v584_v18  ;;  %v735_v19 = vld [vmem:[%s1696_s7 + $0x48] sm:$0xff]  ;;  %v732_v25 = vld [vmem:[%s1696_s7 + $0x30] sm:$0xff] }
  0x1d   : > { %v747_v22 = vld [vmem:[%s1696_s7 + $0xa8] sm:$0xff]  ;;  %v744_v28 = vld [vmem:[%s1696_s7 + $0x90] sm:$0xff] }
  0x1e   : > { %v507_v5 = vld.sshfl [vmem:[#allocation1] sm:$0xff pattern:$0x75316420]  ;;  %v508_v6 = vld.sshfl [vmem:[#allocation1 + $0x8] sm:$0xff pattern:$0x75316420]  ;;  %630 = vmatpush.msra.mxu2 %v583_v20 }
  0x1f   : > { %v512_v7 = vsel %vm511_vm0, %v507_v5, 0.0  ;;  %v513_v8 = vsel %vm511_vm0, %v508_v6, 0.0  ;;  %596 = vst [vmem:[#allocation1] ss:$2 sm:$0xff] %v1274_v2  ;;  %v740_v5 = vld [vmem:[%s1696_s7 + $0x70] sm:$0xff]  ;;  %v755_v6 = vld [vmem:[%s1696_s7 + $0xe8] sm:$0xff] }
  0x20   : > { %v514_v9 = vadd.f32 %v513_v8, %v512_v7  ;;  %631 = vmatpush.msra.mxu2 %v582_v21  ;;  %v739_v7 = vld [vmem:[%s1696_s7 + $0x68] sm:$0xff]  ;;  %v754_v8 = vld [vmem:[%s1696_s7 + $0xe0] sm:$0xff]  ;;  %v748_v20 = vld [vmem:[%s1696_s7 + $0xb0] sm:$0xff] }
  0x21   : > { %v734_v21 = vld [vmem:[%s1696_s7 + $0x40] sm:$0xff] }
  0x22   : > { %515 = vadd.xlane.f32.xlu0 %v514_v9  ;;  %632 = vmatpush.msra.mxu2 %v581_v23  ;;  %v738_v9 = vld [vmem:[%s1696_s7 + $0x60] sm:$0xff]  ;;  %v733_v23 = vld [vmem:[%s1696_s7 + $0x38] sm:$0xff] }
  0x24   : > { %633 = vmatpush.msra.mxu2 %v580_v24  ;;  %v746_v24 = vld [vmem:[%s1696_s7 + $0xa0] sm:$0xff] }
  0x26   : > { %634 = vmatpush.msra.mxu2 %v579_v26  ;;  %v598_v30 = vld.sshfl [vmem:[#allocation1 + $0x8] sm:$0xff pattern:$0x75316420]  ;;  %v597_v37 = vld.sshfl [vmem:[#allocation1] sm:$0xff pattern:$0x75316420] }
  0x27   : > { %674 = vst [vmem:[#allocation1] ss:$2 sm:$0xff] %v593_v36  ;;  %v745_v26 = vld [vmem:[%s1696_s7 + $0x98] sm:$0xff] }
  0x28   : > { %635 = vmatpush.msra.mxu2 %v578_v27  ;;  %v731_v27 = vld [vmem:[%s1696_s7 + $0x28] sm:$0xff] }
  0x2a   : > { %636 = vmatpush.msra.mxu2 %v577_v29  ;;  %v730_v29 = vld [vmem:[%s1696_s7 + $0x20] sm:$0xff] }
  0x2b   : > { %637 = vmatmul.f32.vlgmr.msra.gmra.mxu2 %v598_v30  ;;  %v743_v30 = vld [vmem:[%s1696_s7 + $0x88] sm:$0xff] }
  0x2e   : > { %v676_v63 = vld.sshfl [vmem:[#allocation1 + $0x8] sm:$0xff pattern:$0x75316420]  ;;  %v675_v3 = vld.sshfl [vmem:[#allocation1] sm:$0xff pattern:$0x75316420] }
  0x2f   : > { %1133 = vmatpush.msk.msra.mxu0 %vm511_vm0, %v675_v3  ;;  %764 = vst [vmem:[#allocation1] ss:$2 sm:$0xff] %v1274_v2  ;;  %v899_v3 = vld [vmem:[%s1700_s11 + $0x30] sm:$0xff] }
  0x31   : > { %769 = vmatpush.msrb.mxu0 %v741_v4  ;;  %v918_v4 = vld [vmem:[%s1700_s11 + $0xc8] sm:$0xff] }
  0x33   : > { %770 = vmatpush.msrb.mxu0 %v740_v5  ;;  %v761_v5 = vld [vmem:[%s1697_s8 + $0x18] sm:$0xff] }
  0x35   : > { %771 = vmatpush.msrb.mxu0 %v739_v7  ;;  %v917_v7 = vld [vmem:[%s1700_s11 + $0xc0] sm:$0xff] }
  0x36   : > { %643 = vperm.xlu0 %1159, %v595_v57   ;;  %v765_v36 = vld.sshfl [vmem:[#allocation1] sm:$0xff pattern:$0x75316420] }
  0x37   : > { %772 = vmatpush.msrb.mxu0 %v738_v9  ;;  %v762_v57 = vld [vmem:[%s1698_s9] sm:$0xf] }
  0x38   : > { %v897_v9 = vld [vmem:[%s1700_s11 + $0x20] sm:$0xff] }
  0x39   : > { %773 = vmatpush.msrb.mxu0 %v737_v11  ;;  %v896_v11 = vld [vmem:[%s1700_s11 + $0x18] sm:$0xff] }
  0x3b   : > { %774 = vmatpush.msrb.mxu0 %v736_v13  ;;  %v895_v13 = vld [vmem:[%s1700_s11 + $0x10] sm:$0xff] }
  0x3d   : > { %775 = vmatpush.msrb.mxu0 %v735_v19  ;;  %v911_v19 = vld [vmem:[%s1700_s11 + $0x90] sm:$0xff] }
  0x3f   : > { %776 = vmatpush.msrb.mxu0 %v734_v21  ;;  %v909_v21 = vld [vmem:[%s1700_s11 + $0x80] sm:$0xff] }
  0x41   : > { %777 = vmatpush.msrb.mxu0 %v733_v23 }
  0x43   : > { %778 = vmatpush.msrb.mxu0 %v732_v25 }
  0x45   : > { %779 = vmatpush.msrb.mxu0 %v731_v27 }
  0x47   : > { %780 = vmatpush.msrb.mxu0 %v730_v29  ;;  %v937_v29 = vld [vmem:[%s1701_s12 + $0x60] sm:$0xff] }
  0x95   : > { %v516_v32 = vpop.xlane.xlu0 %515 }
  0x96   : > { %v524_v33 = vmul.f32 %v523_v31, %v516_v32  ;;  %v729_v31 = vld [vmem:[%s1696_s7 + $0x18] sm:$0xff]  ;;  %v742_v32 = vld [vmem:[%s1696_s7 + $0x80] sm:$0xff] }
  0x97   : > { %781 = vmatpush.msrb.mxu0 %v729_v31  ;;  %v933_v31 = vld [vmem:[%s1701_s12 + $0x40] sm:$0xff] }
  0x98   : > { %1129 = vmatpush.msk.msra.mxu1 %vm511_vm0, %v524_v33  ;;  %v728_v33 = vld [vmem:[%s1696_s7 + $0x10] sm:$0xff] }
  0x99   : > { %1130 = vmatmul.msk.f32.vlgmr.msra.gmra.mxu1 %vm525_vm2, %v504_v35  ;;  %v766_v35 = vld.sshfl [vmem:[#allocation1 + $0x8] sm:$0xff pattern:$0x75316420]  ;;  %782 = vmatpush.msrb.mxu0 %v728_v33 }
  0x9a   : > { %601 = vmatpush.msrb.mxu1 %v576_v34  ;;  %v727_v34 = vld [vmem:[%s1696_s7 + $0x8] sm:$0xff]  ;;  %943 = vst [vmem:[#allocation1] ss:$2 sm:$0xff] %v1274_v2  ;;  %v760_v2 = vld [vmem:[%s1697_s8 + $0x10] sm:$0xff] }
  0x9b   : > { %783 = vmatpush.msrb.mxu0 %v727_v34  ;;  %859 = vmatpush.msrb.mxu2 %v760_v2  ;;  %v936_v2 = vld [vmem:[%s1701_s12 + $0x58] sm:$0xff] }
  0x9c   : > { %602 = vmatpush.msrb.mxu1 %v575_v38 }
  0x9e   : > { %603 = vmatpush.msrb.mxu1 %v574_v39 }
  0xa0   : > { %604 = vmatpush.msrb.mxu1 %v573_v40 }
  0xa1   : > { %v944_v27 = vld.sshfl [vmem:[#allocation1] sm:$0xff pattern:$0x75316420] }
  0xa2   : > { %605 = vmatpush.msrb.mxu1 %v572_v41 }
  0xa4   : > { %606 = vmatpush.msrb.mxu1 %v571_v42  ;;  %v763_v42 = vld [vmem:[%s1699_s10] sm:$0xf] }
  0xa5   : > { %811 = vperm.xlu1 %1160, %v763_v42   ;;  %v938_v42 = vld [vmem:[%s1701_s12 + $0x68] sm:$0xff] }
  0xa6   : > { %607 = vmatpush.msrb.mxu1 %v570_v43  ;;  %v758_v43 = vld [vmem:[%s1697_s8] sm:$0xff] }
  0xa7   : > { %860 = vmatpush.msrb.mxu2 %v758_v43  ;;  %v934_v43 = vld [vmem:[%s1701_s12 + $0x48] sm:$0xff] }
  0xa8   : > { %608 = vmatpush.msrb.mxu1 %v569_v44  ;;  %v644_v38 = vpop.permute.xlu0 %643  ;;  %v908_v44 = vld [vmem:[%s1700_s11 + $0x78] sm:$0xff] }
  0xa9   : > { %948 = vmatpush.msra.mxu2 %v908_v44  ;;  %v932_v44 = vld [vmem:[%s1701_s12 + $0x38] sm:$0xff] }
  0xaa   : > { %609 = vmatpush.msrb.mxu1 %v568_v45  ;;  %v924_v45 = vld [vmem:[%s1700_s11 + $0xf8] sm:$0xff] }
  0xac   : > { %610 = vmatpush.msrb.mxu1 %v567_v46  ;;  %v907_v46 = vld [vmem:[%s1700_s11 + $0x70] sm:$0xff] }
  0xad   : > { %949 = vmatpush.msra.mxu2 %v907_v46  ;;  %v930_v46 = vld [vmem:[%s1701_s12 + $0x28] sm:$0xff] }
  0xae   : > { %611 = vmatpush.msrb.mxu1 %v566_v47  ;;  %v638_v59 = vpop.f32.mrf.mxu2  ;;  %v923_v47 = vld [vmem:[%s1700_s11 + $0xf0] sm:$0xff] }
  0xb0   : > { %612 = vmatpush.msrb.mxu1 %v565_v48  ;;  %v906_v48 = vld [vmem:[%s1700_s11 + $0x68] sm:$0xff] }
  0xb1   : > { %950 = vmatpush.msra.mxu2 %v906_v48  ;;  %v928_v48 = vld [vmem:[%s1701_s12 + $0x18] sm:$0xff] }
  0xb2   : > { %613 = vmatpush.msrb.mxu1 %v564_v49  ;;  %v942_v49 = vld [vmem:[%s1703_s14] sm:$0xf] }
  0xb3   : > { %990 = vperm.xlu1 %1160, %v942_v49   ;;  %v925_v49 = vld [vmem:[%s1701_s12] sm:$0xff] }
  0xb4   : > { %614 = vmatpush.msrb.mxu1 %v563_v50  ;;  %v905_v50 = vld [vmem:[%s1700_s11 + $0x60] sm:$0xff] }
  0xb5   : > { %951 = vmatpush.msra.mxu2 %v905_v50  ;;  %v926_v50 = vld [vmem:[%s1701_s12 + $0x8] sm:$0xff] }
  0xb6   : > { %615 = vmatpush.msrb.mxu1 %v562_v51  ;;  %v904_v51 = vld [vmem:[%s1700_s11 + $0x58] sm:$0xff] }
  0xb7   : > { %952 = vmatpush.msra.mxu2 %v904_v51 }
  0xb8   : > { %616 = vmatpush.msrb.mxu1 %v561_v52 }
  0xb9   : > { %617 = vmatmul.f32.vlgmr.msrb.gmra.mxu1 %v597_v37  ;;  %v726_v37 = vld [vmem:[%s1696_s7] sm:$0xff] }
  0xba   : > { %784 = vmatpush.msrb.mxu0 %v726_v37 }
 0x116   : > { %v549_v55 = vpop.f32.mrf.mxu1 }
 0x117   : > { %v550_v56 = vadd.f32 %v549_v55, %v505_v54  ;;  %v812_v23 = vpop.permute.xlu1 %811 }
 0x119   : > { %v552_v58 = vmax.f32 %v550_v56, 0.0 }
 0x11b   : > { %555 = vperm.xlu2 %1161, %v552_v58   ;;  %v903_v58 = vld [vmem:[%s1700_s11 + $0x50] sm:$0xff] }
 0x11c   : > { %953 = vmatpush.msra.mxu2 %v903_v58 }
 0x125   : > { %v991_v51 = vpop.permute.xlu1 %990 }
 0x136   : > { %v618_v60 = vpop.f32.mrf.mxu1 }
 0x137   : > { %v639_v61 = vadd.f32 %v638_v59, %v618_v60  ;;  %v922_v59 = vld [vmem:[%s1700_s11 + $0xe8] sm:$0xff] }
 0x138   : > { %v902_v60 = vld [vmem:[%s1700_s11 + $0x48] sm:$0xff] }
 0x139   : > { %1131 = vmatpush.msk.msra.mxu3 %vm511_vm0, %v639_v61  ;;  %v921_v61 = vld [vmem:[%s1700_s11 + $0xe0] sm:$0xff]  ;;  %954 = vmatpush.msra.mxu2 %v902_v60 }
 0x13a   : > { %1132 = vmatmul.msk.f32.vlgmr.msra.gmra.mxu3 %vm525_vm2, %v594_v62  ;;  %v901_v62 = vld [vmem:[%s1700_s11 + $0x40] sm:$0xff] }
 0x13b   : > { %1135 = vmatpush.msk.msrb.mxu3 %vm511_vm0, %v676_v63  ;;  %v920_v63 = vld [vmem:[%s1700_s11 + $0xd8] sm:$0xff]  ;;  %955 = vmatpush.msra.mxu2 %v901_v62 }
 0x13d   : > { %789 = vmatpush.msra.mxu3 %v757_v0  ;;  %v900_v0 = vld [vmem:[%s1700_s11 + $0x38] sm:$0xff] }
 0x13e   : > { %956 = vmatpush.msra.mxu2 %v900_v0 }
 0x13f   : > { %790 = vmatpush.msra.mxu3 %v756_v1  ;;  %v919_v1 = vld [vmem:[%s1700_s11 + $0xd0] sm:$0xff] }
 0x140   : > { %957 = vmatpush.msra.mxu2 %v899_v3 }
 0x141   : > { %791 = vmatpush.msra.mxu3 %v755_v6  ;;  %v898_v6 = vld [vmem:[%s1700_s11 + $0x28] sm:$0xff] }
 0x142   : > { %958 = vmatpush.msra.mxu2 %v898_v6 }
 0x143   : > { %792 = vmatpush.msra.mxu3 %v754_v8  ;;  %v759_v8 = vld [vmem:[%s1697_s8 + $0x8] sm:$0xff] }
 0x144   : > { %959 = vmatpush.msra.mxu2 %v897_v9 }
 0x145   : > { %793 = vmatpush.msra.mxu3 %v753_v10  ;;  %v916_v10 = vld [vmem:[%s1700_s11 + $0xb8] sm:$0xff] }
 0x146   : > { %960 = vmatpush.msra.mxu2 %v896_v11 }
 0x147   : > { %794 = vmatpush.msra.mxu3 %v752_v12  ;;  %v915_v12 = vld [vmem:[%s1700_s11 + $0xb0] sm:$0xff] }
 0x148   : > { %961 = vmatpush.msra.mxu2 %v895_v13 }
 0x149   : > { %795 = vmatpush.msra.mxu3 %v751_v14  ;;  %v914_v14 = vld [vmem:[%s1700_s11 + $0xa8] sm:$0xff] }
 0x14b   : > { %796 = vmatpush.msra.mxu3 %v750_v15  ;;  %v894_v15 = vld [vmem:[%s1700_s11 + $0x8] sm:$0xff] }
 0x14c   : > { %962 = vmatpush.msra.mxu2 %v894_v15 }
 0x14d   : > { %797 = vmatpush.msra.mxu3 %v749_v16  ;;  %v913_v16 = vld [vmem:[%s1700_s11 + $0xa0] sm:$0xff] }
 0x14f   : > { %798 = vmatpush.msra.mxu3 %v748_v20  ;;  %v910_v20 = vld [vmem:[%s1700_s11 + $0x88] sm:$0xff] }
 0x151   : > { %799 = vmatpush.msra.mxu3 %v747_v22  ;;  %v945_v22 = vld.sshfl [vmem:[#allocation1 + $0x8] sm:$0xff pattern:$0x75316420] }
 0x153   : > { %800 = vmatpush.msra.mxu3 %v746_v24 }
 0x155   : > { %801 = vmatpush.msra.mxu3 %v745_v26 }
 0x157   : > { %802 = vmatpush.msra.mxu3 %v744_v28  ;;  %v939_v28 = vld [vmem:[%s1701_s12 + $0x70] sm:$0xff] }
 0x159   : > { %803 = vmatpush.msra.mxu3 %v743_v30  ;;  %v935_v30 = vld [vmem:[%s1701_s12 + $0x50] sm:$0xff] }
 0x15b   : > { %804 = vmatpush.msra.mxu3 %v742_v32  ;;  %v931_v32 = vld [vmem:[%s1701_s12 + $0x30] sm:$0xff] }
 0x175   : > { %v556_v17 = vpop.permute.xlu2 %555 }
 0x176   : > { %v557_v18 = vrot.slane %v556_v17, 4  ;;  %v893_v17 = vld [vmem:[%s1700_s11] sm:$0xff] }
 0x177   : > { %963 = vmatpush.msra.mxu2 %v893_v17 }
 0x178   : > { %559 = vst [vmem:[%s1387_s30] sm:$0xf0] %v557_v18 }
 0x179   : > { %560 = vst [vmem:[%s1387_s30 + $0x8] sm:$0xf0] %v557_v18  ;;  %v912_v18 = vld [vmem:[%s1700_s11 + $0x98] sm:$0xff] }
 0x1bd   : > { %v669_v39 = vpop.f32.mrf.mxu3 }
 0x1be   : > { %v670_v40 = vadd.f32 %v669_v39, %v644_v38 }
 0x1c0   : > { %v672_v41 = vmax.f32 %v670_v40, 0.0  ;;  %v941_v40 = vld [vmem:[%s1702_s13] sm:$0xf] }
 0x1c2   : > { %1134 = vmatmul.msk.f32.vlgmr.msra.gmra.mxu0 %vm525_vm2, %v672_v41  ;;  %1136 = vmatmul.msk.f32.vlgmr.msrb.gmra.mxu3 %vm525_vm2, %v672_v41  ;;  %v940_v41 = vld [vmem:[%s1701_s12 + $0x78] sm:$0xff] }
 0x1c3   : > { %968 = vmatpush.msra.mxu0 %v924_v45  ;;  %v929_v45 = vld [vmem:[%s1701_s12 + $0x20] sm:$0xff] }
 0x1c5   : > { %969 = vmatpush.msra.mxu0 %v923_v47  ;;  %v927_v47 = vld [vmem:[%s1701_s12 + $0x10] sm:$0xff] }
 0x1c7   : > { %970 = vmatpush.msra.mxu0 %v922_v59 }
 0x1c9   : > { %971 = vmatpush.msra.mxu0 %v921_v61 }
 0x1ca   : > { %805 = vmatmul.f32.vlgmr.msra.gmra.mxu3 %v766_v35  ;;  %785 = vmatmul.f32.vlgmr.msrb.gmra.mxu0 %v765_v36 }
 0x1cb   : > { %972 = vmatpush.msra.mxu0 %v920_v63 }
 0x1cd   : > { %973 = vmatpush.msra.mxu0 %v919_v1 }
 0x1cf   : > { %974 = vmatpush.msra.mxu0 %v918_v4 }
 0x1d1   : > { %975 = vmatpush.msra.mxu0 %v917_v7 }
 0x1d3   : > { %976 = vmatpush.msra.mxu0 %v916_v10 }
 0x1d5   : > { %977 = vmatpush.msra.mxu0 %v915_v12 }
 0x1d7   : > { %978 = vmatpush.msra.mxu0 %v914_v14 }
 0x1d9   : > { %979 = vmatpush.msra.mxu0 %v913_v16 }
 0x1db   : > { %980 = vmatpush.msra.mxu0 %v912_v18 }
 0x1dd   : > { %981 = vmatpush.msra.mxu0 %v911_v19 }
 0x1df   : > { %982 = vmatpush.msra.mxu0 %v910_v20 }
 0x1e1   : > { %983 = vmatpush.msra.mxu0 %v909_v21 }
 0x1e2   : > { %984 = vmatmul.f32.vlgmr.msra.gmra.mxu0 %v945_v22 }
 0x23f   : > { %v701_v52 = vpop.f32.mrf.mxu0 }
 0x240   : > { %724 = vst [vmem:[%s1387_s30 + $0x10] sm:$0xf] %v701_v52 }
 0x245   : > { %v721_v53 = vpop.f32.mrf.mxu3 }
 0x246   : > { %725 = vst [vmem:[%s1387_s30 + $0x18] sm:$0xf] %v721_v53 }
 0x247   : > { %v786_v54 = vpop.f32.mrf.mxu0 }
 0x24d   : > { %v806_v55 = vpop.f32.mrf.mxu3 }
 0x24e   : > { %v807_v56 = vadd.f32 %v806_v55, %v786_v54 }
 0x250   : > { %1137 = vmatpush.msk.msra.mxu1 %vm511_vm0, %v807_v56 }
 0x251   : > { %1138 = vmatmul.msk.f32.vlgmr.msra.gmra.mxu1 %vm525_vm2, %v762_v57 }
 0x252   : > { %879 = vmatpush.msrb.mxu1 %v761_v5 }
 0x254   : > { %880 = vmatpush.msrb.mxu1 %v759_v8 }
 0x256   : > { %1032 = vmatpush.msra.mxu1 %v939_v28 }
 0x258   : > { %1033 = vmatpush.msra.mxu1 %v937_v29 }
 0x25a   : > { %1034 = vmatpush.msra.mxu1 %v935_v30 }
 0x25c   : > { %1035 = vmatpush.msra.mxu1 %v933_v31 }
 0x25e   : > { %1036 = vmatpush.msra.mxu1 %v931_v32 }
 0x25f   : > { %v985_v37 = vpop.f32.mrf.mxu0 }
 0x260   : > { %1037 = vmatpush.msra.mxu1 %v929_v45 }
 0x262   : > { %1038 = vmatpush.msra.mxu1 %v927_v47 }
 0x264   : > { %1039 = vmatpush.msra.mxu1 %v925_v49 }
 0x2ce   : > { %v837_v24 = vpop.f32.mrf.mxu1 }
 0x2cf   : > { %v838_v25 = vadd.f32 %v837_v24, %v812_v23 }
 0x2d1   : > { %v840_v26 = vmax.f32 %v838_v25, 0.0 }
 0x2d3   : > { %1139 = vmatmul.msk.f32.vlgmr.msrb.gmra.mxu2 %vm841_vm3, %v840_v26  ;;  %1140 = vmatmul.msk.f32.vlgmr.msrb.gmra.mxu1 %vm841_vm3, %v840_v26 }
 0x2db   : > { %964 = vmatmul.f32.vlgmr.msra.gmra.mxu2 %v944_v27 }
 0x350   : > { %v882_v33 = vpop.f32.mrf.mxu1 }
 0x351   : > { %v888_v34 = vrot.slane %v882_v33, 4 }
 0x353   : > { %892 = vst [vmem:[%s1387_s30 + $0x18] sm:$0xf0] %v888_v34 }
 0x356   : > { %v862_v35 = vpop.f32.mrf.mxu2 }
 0x357   : > { %v887_v36 = vrot.slane %v862_v35, 4 }
 0x359   : > { %891 = vst [vmem:[%s1387_s30 + $0x10] sm:$0xf0] %v887_v36 }
 0x35e   : > { %v965_v38 = vpop.f32.mrf.mxu2 }
 0x35f   : > { %v986_v39 = vadd.f32 %v985_v37, %v965_v38 }
 0x361   : > { %1141 = vmatpush.msk.msrb.mxu3 %vm511_vm0, %v986_v39 }
 0x362   : > { %1142 = vmatmul.msk.f32.vlgmr.msrb.gmra.mxu3 %vm525_vm2, %v941_v40 }
 0x363   : > { %1052 = vmatpush.msra.mxu3 %v940_v41 }
 0x365   : > { %1053 = vmatpush.msra.mxu3 %v938_v42 }
 0x367   : > { %1054 = vmatpush.msra.mxu3 %v936_v2 }
 0x369   : > { %1055 = vmatpush.msra.mxu3 %v934_v43 }
 0x36b   : > { %1056 = vmatpush.msra.mxu3 %v932_v44 }
 0x36d   : > { %1057 = vmatpush.msra.mxu3 %v930_v46 }
 0x36f   : > { %1058 = vmatpush.msra.mxu3 %v928_v48 }
 0x371   : > { %1059 = vmatpush.msra.mxu3 %v926_v50 }
 0x3e5   : > { %v1016_v52 = vpop.f32.mrf.mxu3 }
 0x3e6   : > { %v1017_v53 = vadd.f32 %v1016_v52, %v991_v51 }
 0x3e8   : > { %v1019_v54 = vmax.f32 %v1017_v53, 0.0 }
 0x3ea   : > { %1143 = vmatmul.msk.f32.vlgmr.msra.gmra.mxu1 %vm1020_vm4, %v1019_v54  ;;  %1144 = vmatmul.msk.f32.vlgmr.msra.gmra.mxu3 %vm1020_vm4, %v1019_v54 }
 0x467   : > { %v1041_v55 = vpop.f32.mrf.mxu1 }
 0x468   : > { %1064 = vst [vmem:[%s1387_s30 + $0x20] sm:$0xf] %v1041_v55 }
 0x46d   : > { %v1061_v56 = vpop.f32.mrf.mxu3 }
 0x46e   : > { %1065 = vst [vmem:[%s1387_s30 + $0x28] sm:$0xf] %v1061_v56 }
 0x46f PF: > { %s25_s18 = sadd.s32 1, %s1170_s18  }
 0x470   : > { %p22_p4 = scmp.ge.s32.totalorder %s25_s18, 4  }
 0x472   :  { %24 = sbr.rel (!%p22_p4) target bundleno = 1 (0x1), region = 110 }

</bundles_post_ra>
